<compile_context>
chip_gen: v5e
topology: v5e:2x2
jax: 0.10.0
libtpu: 0.0.40
codegen_flags: <defaults>
</compile_context>

<pallas_src>
from functools import lru_cache

import numpy as np

import jax
import jax.numpy as jnp
from jax.experimental import pallas as pl
from jax.experimental.pallas import tpu as pltpu


def _adaptive_pool_matrix(in_size: int, out_size: int) -> np.ndarray:
    """1-D pooling matrix P (out_size, in_size) matching F.adaptive_avg_pool."""
    P = np.zeros((out_size, in_size), dtype=np.float32)
    for i in range(out_size):
        start = (i * in_size) // out_size
        end = -((-(i + 1) * in_size) // out_size)   # ceil((i+1)*in/out)
        P[i, start:end] = 1.0 / float(end - start)
    return P


@lru_cache(maxsize=None)
def _pool_constants(H: int, W: int, C: int, pool_hw: tuple):
    """Cached (Ph_stacked, Pwt_packed) device constants for the non-identity scales.

    Ph_stacked : (sum_h, H)            -- vertical stack of per-scale Ph.
    Pwt_packed : (C*W, sum_s C*w_s)    -- per-scale channel-block-diagonal Pw^T,
                                          packed horizontally.
    """
    phs = [_adaptive_pool_matrix(H, h) for (h, _) in pool_hw]
    ph_stacked = np.concatenate(phs, axis=0)

    blocks = []
    for (_, w) in pool_hw:
        pwt = _adaptive_pool_matrix(W, w).T                      # (W, w)
        bd = np.zeros((C * W, C * w), dtype=np.float32)
        for c in range(C):
            bd[c * W:(c + 1) * W, c * w:(c + 1) * w] = pwt
        blocks.append(bd)
    pwt_packed = np.concatenate(blocks, axis=1)

    return jnp.asarray(ph_stacked), jnp.asarray(pwt_packed)


def _build_kernel(C, H, W, scale_infos, has_pool, num_scales):
    """scale_infos: tuple of (h, w, is_identity, row_off, cw_off) per scale."""

    def kernel(*refs):
        i = 0
        tgt_ref = refs[i]; i += 1
        if has_pool:
            ph_ref = refs[i]; i += 1
            pwt_ref = refs[i]; i += 1
        out_refs = refs[i:i + num_scales]; i += num_scales
        loss_ref = refs[i]

        rows_all = None
        if has_pool:
            # Channels batched along lanes: RHS is (H, C*W) in the target's native
            # dtype (no f32 copy); Ph stays f32, accumulation in f32 on the MXU.
            if C == 1:
                rhs = tgt_ref[0, 0]
            else:
                rhs = jnp.concatenate([tgt_ref[0, c] for c in range(C)], axis=1)
            rows_all = jnp.dot(ph_ref[...], rhs,
                               preferred_element_type=jnp.float32)   # (sum_h, C*W)

        for s, (h, w, identity, row_off, cw_off) in enumerate(scale_infos):
            o_ref = out_refs[s]
            sq = None
            if identity:
                # Full-resolution scale: pooling is the identity -> plain diff.
                for c in range(C):
                    d = (tgt_ref[0, c].astype(jnp.float32)
                         - o_ref[0, c].astype(jnp.float32))
                    sq = d * d if sq is None else sq + d * d
            else:
                rows_s = rows_all[row_off:row_off + h, :]            # (h, C*W)
                pwt_s = pwt_ref[:, cw_off:cw_off + C * w]            # (C*W, C*w)
                pooled = jnp.dot(rows_s, pwt_s,
                                 preferred_element_type=jnp.float32)  # (h, C*w)
                for c in range(C):
                    d = (pooled[:, c * w:(c + 1) * w]
                         - o_ref[0, c].astype(jnp.float32))
                    sq = d * d if sq is None else sq + d * d
            epe_sum = jnp.sum(jnp.sqrt(sq))      # per-pixel L2 over C, summed
            # One broadcast store per scale (no iota/where scatter).
            loss_ref[0, s] = jnp.full((8, 128), epe_sum, dtype=jnp.float32)

    return kernel


def multiscale_epe(network_output, target_flow, weights):
    if not isinstance(network_output, (tuple, list)):
        network_output = [network_output]
    network_output = list(network_output)
    assert len(weights) == len(network_output)
    num_scales = len(network_output)
    B, C, H, W = target_flow.shape

    # Static per-scale metadata; identity scales bypass the pooling matmuls.
    scale_infos = []
    pool_hw = []
    row_off = 0
    cw_off = 0
    for out in network_output:
        b, c, h, w = out.shape
        assert b == B and c == C
        if h == H and w == W:
            scale_infos.append((h, w, True, 0, 0))
        else:
            scale_infos.append((h, w, False, row_off, cw_off))
            pool_hw.append((h, w))
            row_off += h
            cw_off += C * w
    has_pool = bool(pool_hw)
    sum_h, total_cw = row_off, cw_off

    in_arrays = [target_flow]                         # native dtype on the wire
    in_specs = [pl.BlockSpec((1, C, H, W), lambda i: (i, 0, 0, 0))]
    if has_pool:
        ph_stacked, pwt_packed = _pool_constants(H, W, C, tuple(pool_hw))
        in_arrays += [ph_stacked, pwt_packed]
        in_specs += [
            pl.BlockSpec((sum_h, H), lambda i: (0, 0)),
            pl.BlockSpec((C * W, total_cw), lambda i: (0, 0)),
        ]
    for out in network_output:
        _, _, h, w = out.shape
        in_arrays.append(out)
        in_specs.append(pl.BlockSpec((1, C, h, w), lambda i: (i, 0, 0, 0)))

    # Explicit VMEM budget: double-buffered blocks + f32 working set, clamped to a
    # range that is safe on v5e/v6e (128 MiB physical) and v7x (64 MiB physical).
    blk_bytes = C * H * W * target_flow.dtype.itemsize
    for out in network_output:
        _, _, h, w = out.shape
        blk_bytes += C * h * w * out.dtype.itemsize
    if has_pool:
        blk_bytes += (sum_h * H + C * W * total_cw) * 4
    blk_bytes += num_scales * 8 * 128 * 4
    working = 4 * (sum_h * C * W + C * H * W) * 4
    vmem_limit = int(min(max(2 * blk_bytes + working + (2 << 20), 32 * 1024 * 1024),
                         64 * 1024 * 1024))
    # TODO(synk): for very large flow resolutions, additionally tile H as an inner
    # "arbitrary" grid axis (K-accumulate the (sum_h, C*W) rows in VMEM scratch) and
    # consider pipeline_mode=pl.Buffered(3) on the target block if the DMA is exposed.

    kernel = _build_kernel(C, H, W, tuple(scale_infos), has_pool, num_scales)

    partials = pl.pallas_call(
        kernel,
        out_shape=jax.ShapeDtypeStruct((B, num_scales, 8, 128), jnp.float32),
        grid=(B,),
        in_specs=in_specs,
        out_specs=pl.BlockSpec((1, num_scales, 8, 128), lambda i: (i, 0, 0, 0)),
        compiler_params=pltpu.CompilerParams(
            dimension_semantics=("parallel",),
            vmem_limit_bytes=vmem_limit),
    )(*in_arrays)

    per_scale = jnp.sum(partials[:, :, 0, 0], axis=0)                # (num_scales,)
    w_arr = jnp.asarray(list(weights), dtype=jnp.float32)
    # EPE(..., mean=False) == sum / batch_size, then weighted sum over scales.
    return jnp.sum(w_arr * per_scale) / B


class MultiscaleEPE:
    """JAX/Pallas equivalent of the PyTorch MultiscaleEPE module (sparse=False path)."""

    def __init__(self, multiscale_weights):
        self.w_m = multiscale_weights

    def __call__(self, output_disparity, label_disparity):
        return multiscale_epe(output_disparity, label_disparity, self.w_m)


def _reference(network_output, target, weights):
    """Pure-JAX reference mirroring the PyTorch math (f32)."""
    loss = 0.0
    t = target.astype(jnp.float32)
    for o, wgt in zip(network_output, weights):
        b, _, h, w = o.shape
        _, _, H, W = target.shape
        ph = jnp.asarray(_adaptive_pool_matrix(H, h))
        pw = jnp.asarray(_adaptive_pool_matrix(W, w))
        pooled = jnp.einsum("hH,bcHW,wW->bchw", ph, t, pw)
        epe = jnp.sqrt(jnp.sum((pooled - o.astype(jnp.float32)) ** 2, axis=1))
        loss = loss + wgt * (jnp.sum(epe) / b)
    return loss


# TODO(synk): the sparse=True masked-EPE branch (sparse_max_pool + boolean gather on
# zero-valued target pixels) is not implemented; the module's forward always calls
# multiscaleEPE with sparse=False.

if __name__ == "__main__":
    key = jax.random.PRNGKey(0)
    k1, k2, k3, k4 = jax.random.split(key, 4)

    B, C, H, W = 2, 2, 16, 16
    target = jax.random.normal(k1, (B, C, H, W), dtype=jnp.float32)
    out_full = jax.random.normal(k2, (B, C, 16, 16), dtype=jnp.float32)   # identity scale
    out_half = jax.random.normal(k3, (B, C, 8, 8), dtype=jnp.float32)     # 1/2 scale
    out_odd = jax.random.normal(k4, (B, C, 6, 6), dtype=jnp.float32)      # non-divisible
    weights = [0.005, 0.01, 0.02]

    model = MultiscaleEPE(weights)
    loss = model([out_full, out_half, out_odd], target)
    loss = jax.block_until_ready(loss)

    ref = _reference([out_full, out_half, out_odd], target, weights)
    assert jnp.allclose(loss, ref, atol=1e-4, rtol=1e-4), (float(loss), float(ref))

    print("KERNEL_OK")
</pallas_src>

<mosaic_0001>
module attributes {stable_mosaic.version = 11 : i64} {
  func.func @kernel(%arg0: i32, %arg1: memref<1x2x16x16xf32, #tpu.memory_space<vmem>>, %arg2: memref<14x16xf32, #tpu.memory_space<vmem>>, %arg3: memref<32x28xf32, #tpu.memory_space<vmem>>, %arg4: memref<1x2x16x16xf32, #tpu.memory_space<vmem>>, %arg5: memref<1x2x8x8xf32, #tpu.memory_space<vmem>>, %arg6: memref<1x2x6x6xf32, #tpu.memory_space<vmem>>, %arg7: memref<1x3x8x128xf32, #tpu.memory_space<vmem>>) attributes {dimension_semantics = [#tpu.dimension_semantics<parallel>], iteration_bounds = array<i64: 2>, scalar_prefetch = 0 : i64, scratch_operands = 0 : i64, tpu.core_type = #tpu.core_type<tc>, window_params = [{transform_indices = @transform_0, window_bounds = array<i64: 1, 2, 16, 16>}, {pipeline_mode = #tpu.pipeline_mode<synchronous>, transform_indices = @transform_1, window_bounds = array<i64: 14, 16>}, {pipeline_mode = #tpu.pipeline_mode<synchronous>, transform_indices = @transform_2, window_bounds = array<i64: 32, 28>}, {transform_indices = @transform_3, window_bounds = array<i64: 1, 2, 16, 16>}, {transform_indices = @transform_4, window_bounds = array<i64: 1, 2, 8, 8>}, {transform_indices = @transform_5, window_bounds = array<i64: 1, 2, 6, 6>}, {transform_indices = @transform_6, window_bounds = array<i64: 1, 3, 8, 128>}]} {
    %c0 = arith.constant 0 : index
    %c0_0 = arith.constant 0 : index
    %c0_1 = arith.constant 0 : index
    %c0_2 = arith.constant 0 : index
    %0 = vector.load %arg1[%c0, %c0_0, %c0_1, %c0_2] : memref<1x2x16x16xf32, #tpu.memory_space<vmem>>, vector<1x1x16x16xf32>
    %1 = vector.shape_cast %0 : vector<1x1x16x16xf32> to vector<16x16xf32>
    %c0_3 = arith.constant 0 : index
    %c1 = arith.constant 1 : index
    %c0_4 = arith.constant 0 : index
    %c0_5 = arith.constant 0 : index
    %2 = vector.load %arg1[%c0_3, %c1, %c0_4, %c0_5] : memref<1x2x16x16xf32, #tpu.memory_space<vmem>>, vector<1x1x16x16xf32>
    %3 = vector.shape_cast %2 : vector<1x1x16x16xf32> to vector<16x16xf32>
    %4 = tpu.concatenate %1, %3 in 1 : vector<16x16xf32>, vector<16x16xf32> -> vector<16x32xf32>
    %c0_6 = arith.constant 0 : index
    %c0_7 = arith.constant 0 : index
    %5 = vector.load %arg2[%c0_6, %c0_7] : memref<14x16xf32, #tpu.memory_space<vmem>>, vector<14x16xf32>
    %cst = arith.constant dense<0.000000e+00> : vector<14x32xf32>
    %6 = tpu.matmul %5, %4, %cst {dimension_numbers = #tpu.dot_dimension_numbers<[1], [0], [0], [1], [0, 0, 1, 1], [], []>} : vector<14x16xf32>, vector<16x32xf32>, vector<14x32xf32> -> vector<14x32xf32>
    %c0_8 = arith.constant 0 : index
    %c0_9 = arith.constant 0 : index
    %c0_10 = arith.constant 0 : index
    %c0_11 = arith.constant 0 : index
    %7 = vector.load %arg1[%c0_8, %c0_9, %c0_10, %c0_11] : memref<1x2x16x16xf32, #tpu.memory_space<vmem>>, vector<1x1x16x16xf32>
    %8 = vector.shape_cast %7 : vector<1x1x16x16xf32> to vector<16x16xf32>
    %c0_12 = arith.constant 0 : index
    %c0_13 = arith.constant 0 : index
    %c0_14 = arith.constant 0 : index
    %c0_15 = arith.constant 0 : index
    %9 = vector.load %arg4[%c0_12, %c0_13, %c0_14, %c0_15] : memref<1x2x16x16xf32, #tpu.memory_space<vmem>>, vector<1x1x16x16xf32>
    %10 = vector.shape_cast %9 : vector<1x1x16x16xf32> to vector<16x16xf32>
    %11 = arith.subf %8, %10 : vector<16x16xf32>
    %12 = arith.mulf %11, %11 : vector<16x16xf32>
    %c0_16 = arith.constant 0 : index
    %c1_17 = arith.constant 1 : index
    %c0_18 = arith.constant 0 : index
    %c0_19 = arith.constant 0 : index
    %13 = vector.load %arg1[%c0_16, %c1_17, %c0_18, %c0_19] : memref<1x2x16x16xf32, #tpu.memory_space<vmem>>, vector<1x1x16x16xf32>
    %14 = vector.shape_cast %13 : vector<1x1x16x16xf32> to vector<16x16xf32>
    %c0_20 = arith.constant 0 : index
    %c1_21 = arith.constant 1 : index
    %c0_22 = arith.constant 0 : index
    %c0_23 = arith.constant 0 : index
    %15 = vector.load %arg4[%c0_20, %c1_21, %c0_22, %c0_23] : memref<1x2x16x16xf32, #tpu.memory_space<vmem>>, vector<1x1x16x16xf32>
    %16 = vector.shape_cast %15 : vector<1x1x16x16xf32> to vector<16x16xf32>
    %17 = arith.subf %14, %16 : vector<16x16xf32>
    %18 = arith.mulf %17, %17 : vector<16x16xf32>
    %19 = arith.addf %12, %18 : vector<16x16xf32>
    %20 = math.sqrt %19 : vector<16x16xf32>
    %21 = vector.shape_cast %20 : vector<16x16xf32> to vector<1x16x16xf32>
    %cst_24 = arith.constant dense<0.000000e+00> : vector<1xf32>
    %22 = vector.multi_reduction <add>, %21, %cst_24 [1, 2] : vector<1x16x16xf32> to vector<1xf32>
    %23 = vector.shape_cast %22 : vector<1xf32> to vector<1x1x1xf32>
    %24 = vector.extract %23[0, 0, 0] : f32 from vector<1x1x1xf32>
    %25 = vector.broadcast %24 : f32 to vector<8x128xf32>
    %c0_25 = arith.constant 0 : index
    %c0_26 = arith.constant 0 : index
    %c0_27 = arith.constant 0 : index
    %c0_28 = arith.constant 0 : index
    %26 = vector.load %arg7[%c0_25, %c0_26, %c0_27, %c0_28] : memref<1x3x8x128xf32, #tpu.memory_space<vmem>>, vector<1x1x8x128xf32>
    %27 = vector.shape_cast %26 : vector<1x1x8x128xf32> to vector<8x128xf32>
    %28 = vector.shape_cast %25 : vector<8x128xf32> to vector<1x1x8x128xf32>
    tpu.vector_store %arg7[%c0_25, %c0_26, %c0_27, %c0_28], %28 {strides = array<i32>} : memref<1x3x8x128xf32, #tpu.memory_space<vmem>>, vector<1x1x8x128xf32>,
    %29 = vector.extract_strided_slice %6 {offsets = [0, 0], sizes = [8, 32], strides = [1, 1]} : vector<14x32xf32> to vector<8x32xf32>
    %c0_29 = arith.constant 0 : index
    %c0_30 = arith.constant 0 : index
    %30 = vector.load %arg3[%c0_29, %c0_30] : memref<32x28xf32, #tpu.memory_space<vmem>>, vector<32x16xf32>
    %cst_31 = arith.constant dense<0.000000e+00> : vector<8x16xf32>
    %31 = tpu.matmul %29, %30, %cst_31 {dimension_numbers = #tpu.dot_dimension_numbers<[1], [0], [0], [1], [0, 0, 1, 1], [], []>} : vector<8x32xf32>, vector<32x16xf32>, vector<8x16xf32> -> vector<8x16xf32>
    %32 = vector.extract_strided_slice %31 {offsets = [0, 0], sizes = [8, 8], strides = [1, 1]} : vector<8x16xf32> to vector<8x8xf32>
    %c0_32 = arith.constant 0 : index
    %c0_33 = arith.constant 0 : index
    %c0_34 = arith.constant 0 : index
    %c0_35 = arith.constant 0 : index
    %33 = vector.load %arg5[%c0_32, %c0_33, %c0_34, %c0_35] : memref<1x2x8x8xf32, #tpu.memory_space<vmem>>, vector<1x1x8x8xf32>
    %34 = vector.shape_cast %33 : vector<1x1x8x8xf32> to vector<8x8xf32>
    %35 = arith.subf %32, %34 : vector<8x8xf32>
    %36 = arith.mulf %35, %35 : vector<8x8xf32>
    %37 = vector.extract_strided_slice %31 {offsets = [0, 8], sizes = [8, 8], strides = [1, 1]} : vector<8x16xf32> to vector<8x8xf32>
    %c0_36 = arith.constant 0 : index
    %c1_37 = arith.constant 1 : index
    %c0_38 = arith.constant 0 : index
    %c0_39 = arith.constant 0 : index
    %38 = vector.load %arg5[%c0_36, %c1_37, %c0_38, %c0_39] : memref<1x2x8x8xf32, #tpu.memory_space<vmem>>, vector<1x1x8x8xf32>
    %39 = vector.shape_cast %38 : vector<1x1x8x8xf32> to vector<8x8xf32>
    %40 = arith.subf %37, %39 : vector<8x8xf32>
    %41 = arith.mulf %40, %40 : vector<8x8xf32>
    %42 = arith.addf %36, %41 : vector<8x8xf32>
    %43 = math.sqrt %42 : vector<8x8xf32>
    %44 = vector.shape_cast %43 : vector<8x8xf32> to vector<1x8x8xf32>
    %cst_40 = arith.constant dense<0.000000e+00> : vector<1xf32>
    %45 = vector.multi_reduction <add>, %44, %cst_40 [1, 2] : vector<1x8x8xf32> to vector<1xf32>
    %46 = vector.shape_cast %45 : vector<1xf32> to vector<1x1x1xf32>
    %47 = vector.extract %46[0, 0, 0] : f32 from vector<1x1x1xf32>
    %48 = vector.broadcast %47 : f32 to vector<8x128xf32>
    %c0_41 = arith.constant 0 : index
    %c1_42 = arith.constant 1 : index
    %c0_43 = arith.constant 0 : index
    %c0_44 = arith.constant 0 : index
    %49 = vector.load %arg7[%c0_41, %c1_42, %c0_43, %c0_44] : memref<1x3x8x128xf32, #tpu.memory_space<vmem>>, vector<1x1x8x128xf32>
    %50 = vector.shape_cast %49 : vector<1x1x8x128xf32> to vector<8x128xf32>
    %51 = vector.shape_cast %48 : vector<8x128xf32> to vector<1x1x8x128xf32>
    tpu.vector_store %arg7[%c0_41, %c1_42, %c0_43, %c0_44], %51 {strides = array<i32>} : memref<1x3x8x128xf32, #tpu.memory_space<vmem>>, vector<1x1x8x128xf32>,
    %52 = vector.extract_strided_slice %6 {offsets = [8, 0], sizes = [6, 32], strides = [1, 1]} : vector<14x32xf32> to vector<6x32xf32>
    %c0_45 = arith.constant 0 : index
    %c16 = arith.constant 16 : index
    %53 = vector.load %arg3[%c0_45, %c16] : memref<32x28xf32, #tpu.memory_space<vmem>>, vector<32x12xf32>
    %cst_46 = arith.constant dense<0.000000e+00> : vector<6x12xf32>
    %54 = tpu.matmul %52, %53, %cst_46 {dimension_numbers = #tpu.dot_dimension_numbers<[1], [0], [0], [1], [0, 0, 1, 1], [], []>} : vector<6x32xf32>, vector<32x12xf32>, vector<6x12xf32> -> vector<6x12xf32>
    %55 = vector.extract_strided_slice %54 {offsets = [0, 0], sizes = [6, 6], strides = [1, 1]} : vector<6x12xf32> to vector<6x6xf32>
    %c0_47 = arith.constant 0 : index
    %c0_48 = arith.constant 0 : index
    %c0_49 = arith.constant 0 : index
    %c0_50 = arith.constant 0 : index
    %56 = vector.load %arg6[%c0_47, %c0_48, %c0_49, %c0_50] : memref<1x2x6x6xf32, #tpu.memory_space<vmem>>, vector<1x1x6x6xf32>
    %57 = vector.shape_cast %56 : vector<1x1x6x6xf32> to vector<6x6xf32>
    %58 = arith.subf %55, %57 : vector<6x6xf32>
    %59 = arith.mulf %58, %58 : vector<6x6xf32>
    %60 = vector.extract_strided_slice %54 {offsets = [0, 6], sizes = [6, 6], strides = [1, 1]} : vector<6x12xf32> to vector<6x6xf32>
    %c0_51 = arith.constant 0 : index
    %c1_52 = arith.constant 1 : index
    %c0_53 = arith.constant 0 : index
    %c0_54 = arith.constant 0 : index
    %61 = vector.load %arg6[%c0_51, %c1_52, %c0_53, %c0_54] : memref<1x2x6x6xf32, #tpu.memory_space<vmem>>, vector<1x1x6x6xf32>
    %62 = vector.shape_cast %61 : vector<1x1x6x6xf32> to vector<6x6xf32>
    %63 = arith.subf %60, %62 : vector<6x6xf32>
    %64 = arith.mulf %63, %63 : vector<6x6xf32>
    %65 = arith.addf %59, %64 : vector<6x6xf32>
    %66 = math.sqrt %65 : vector<6x6xf32>
    %67 = vector.shape_cast %66 : vector<6x6xf32> to vector<1x6x6xf32>
    %cst_55 = arith.constant dense<0.000000e+00> : vector<1xf32>
    %68 = vector.multi_reduction <add>, %67, %cst_55 [1, 2] : vector<1x6x6xf32> to vector<1xf32>
    %69 = vector.shape_cast %68 : vector<1xf32> to vector<1x1x1xf32>
    %70 = vector.extract %69[0, 0, 0] : f32 from vector<1x1x1xf32>
    %71 = vector.broadcast %70 : f32 to vector<8x128xf32>
    %c0_56 = arith.constant 0 : index
    %c2 = arith.constant 2 : index
    %c0_57 = arith.constant 0 : index
    %c0_58 = arith.constant 0 : index
    %72 = vector.load %arg7[%c0_56, %c2, %c0_57, %c0_58] : memref<1x3x8x128xf32, #tpu.memory_space<vmem>>, vector<1x1x8x128xf32>
    %73 = vector.shape_cast %72 : vector<1x1x8x128xf32> to vector<8x128xf32>
    %74 = vector.shape_cast %71 : vector<8x128xf32> to vector<1x1x8x128xf32>
    tpu.vector_store %arg7[%c0_56, %c2, %c0_57, %c0_58], %74 {strides = array<i32>} : memref<1x3x8x128xf32, #tpu.memory_space<vmem>>, vector<1x1x8x128xf32>,
    return
  }
  func.func @transform_0(%arg0: i32) -> (i32, i32, i32, i32) {
    %c0_i32 = arith.constant 0 : i32
    %c0_i32_0 = arith.constant 0 : i32
    %c0_i32_1 = arith.constant 0 : i32
    %c0_i32_2 = arith.constant 0 : i32
    return %arg0, %c0_i32, %c0_i32_0, %c0_i32_1 : i32, i32, i32, i32
  }
  func.func @transform_1(%arg0: i32) -> (i32, i32) {
    %c0_i32 = arith.constant 0 : i32
    %c0_i32_0 = arith.constant 0 : i32
    %c0_i32_1 = arith.constant 0 : i32
    return %c0_i32, %c0_i32_0 : i32, i32
  }
  func.func @transform_2(%arg0: i32) -> (i32, i32) {
    %c0_i32 = arith.constant 0 : i32
    %c0_i32_0 = arith.constant 0 : i32
    %c0_i32_1 = arith.constant 0 : i32
    return %c0_i32, %c0_i32_0 : i32, i32
  }
  func.func @transform_3(%arg0: i32) -> (i32, i32, i32, i32) {
    %c0_i32 = arith.constant 0 : i32
    %c0_i32_0 = arith.constant 0 : i32
    %c0_i32_1 = arith.constant 0 : i32
    %c0_i32_2 = arith.constant 0 : i32
    return %arg0, %c0_i32, %c0_i32_0, %c0_i32_1 : i32, i32, i32, i32
  }
  func.func @transform_4(%arg0: i32) -> (i32, i32, i32, i32) {
    %c0_i32 = arith.constant 0 : i32
    %c0_i32_0 = arith.constant 0 : i32
    %c0_i32_1 = arith.constant 0 : i32
    %c0_i32_2 = arith.constant 0 : i32
    return %arg0, %c0_i32, %c0_i32_0, %c0_i32_1 : i32, i32, i32, i32
  }
  func.func @transform_5(%arg0: i32) -> (i32, i32, i32, i32) {
    %c0_i32 = arith.constant 0 : i32
    %c0_i32_0 = arith.constant 0 : i32
    %c0_i32_1 = arith.constant 0 : i32
    %c0_i32_2 = arith.constant 0 : i32
    return %arg0, %c0_i32, %c0_i32_0, %c0_i32_1 : i32, i32, i32, i32
  }
  func.func @transform_6(%arg0: i32) -> (i32, i32, i32, i32) {
    %c0_i32 = arith.constant 0 : i32
    %c0_i32_0 = arith.constant 0 : i32
    %c0_i32_1 = arith.constant 0 : i32
    %c0_i32_2 = arith.constant 0 : i32
    return %arg0, %c0_i32, %c0_i32_0, %c0_i32_1 : i32, i32, i32, i32
  }
}

</mosaic_0001>

<bundles_post_ra>
// kernel: tpu_custom_call.1
= control target key start
LH: loop header
LB: loop body
LE: loop exit
PB: predicated region body
PF: predicated region fallthrough
CT: control target
= control target key end

     0   :  { %s1361_s0 = inlined_call_operand.hbm [shape: f32[2,2,16,16], index: 0, kind: input, shape index: {}]   ;;  %s1362_s1 = inlined_call_operand.vmem [shape: f32[14,16], index: 1, kind: input, shape index: {}]   ;;  %s1363_s2 = inlined_call_operand.vmem [shape: f32[32,28], index: 2, kind: input, shape index: {}]   ;;  %s1364_s3 = inlined_call_operand.hbm [shape: f32[2,2,16,16], index: 3, kind: input, shape index: {}]   ;;  %s1365_s4 = inlined_call_operand.hbm [shape: f32[2,2,8,8], index: 4, kind: input, shape index: {}]   ;;  %s1366_s5 = inlined_call_operand.vmem [shape: f32[2,2,6,6], index: 5, kind: input, shape index: {}]   ;;  %s1367_s6 = inlined_call_operand.hbm [shape: f32[2,3,8,128], index: 6, kind: output, shape index: {}]  }
   0x1   :  { %1376 = sst [smem:[#allocation16_spill]] %s1364_s3 }
   0x2   :  { %11 = vsyncpa [#allocation3], 0 }
   0x3   :  { %13 = vsyncpa [#allocation3 + $0x1], 0 }
   0x4   :  { %14 = vsyncpa [#allocation6], 0 }
   0x5   :  { %16 = vsyncpa [#allocation6 + $0x1], 0 }
   0x6   :  { %17 = vsyncpa [#allocation4], 0 }
   0x7   :  { %19 = vsyncpa [#allocation4 + $0x1], 0  ;;  %s1113_s21 = smov 0   ;;  %s1115_s22 = smov 0  }
   0x8   :  { %s1117_s23 = smov 0   ;;  %s1119_s24 = smov 0  }
   0x9 LB: > { %1377 = sst [smem:[#allocation12_spill]] %s1063_s23  ;;  %s1134_s25 = sadd.s32 4294967295, %s1067_s24   ;;  %s1067_s24 = sphi %s1119_s24, %s1391_s24   ;;  %s1063_s23 = sphi %s1117_s23, %s1393_s23   ;;  %s1059_s22 = sphi %s1115_s22, %s1395_s22   ;;  %s1055_s21 = sphi %s1113_s21, %s1394_s21  }
   0xa   : > { %s772_s26 = sadd.s32 4294967294, %s1067_s24   ;;  %s1138_s27 = sadd.s32 1, %s1067_s24  }
   0xb   : > { %1378 = sst [smem:[#allocation13_spill]] %s1138_s27  ;;  %s32_s28 = sadd.s32 1, %s1063_s23 }
   0xc   : > { %s29_s29 = ssub.s32 %s1067_s24, %s1138_s27  ;;  %p39_p0 = scmp.ne.s32.totalorder %s1063_s23, %s1059_s22 }
   0xd   : > { %p30_p1 = scmp.eq.s32.totalorder %s29_s29, 0  ;;  %p40_p2 = scmp.eq.s32.totalorder %s1067_s24, 0 }
   0xe   : > { %p45_p3 = scmp.ne.s32.totalorder %s1059_s22, %s1055_s21  ;;  %p46_p4 = scmp.eq.s32.totalorder %s1134_s25, 0 }
   0xf   : > { %s1150_s30 = scalar_select %p30_p1, %s1063_s23, %s32_s28  }
  0x10   : > { %p41_p5 = por %p40_p2, %p39_p0  ;;  %p1152_p6 = por %p46_p4, %p45_p3 }
  0x11   : > { %1379 = sst [smem:[#allocation14_spill]] %s1150_s30  ;;  %p189_p7 = scmp.eq.s32.totalorder %s1134_s25, 1 }
  0x12   : > { %p195_p8 = scmp.eq.s32.totalorder %s772_s26, 1  ;;  %p774_p9 = scmp.ge.s32.totalorder %s1067_s24, 2 }
  0x13   : > { %p841_p10 = scmp.lt.s32.totalorder %s1067_s24, 2  ;;  %p1159_p11 = por %p189_p7, %p39_p0 }
  0x14   : > { %p1163_p12 = por %p195_p8, %p45_p3  ;;  %s1168_s10 = sand.u32 1, %s1063_s23  }
  0x15   : > { %s1369_s11 = sshll.u32 %s1067_s24, 5  ;;  %s1368_s12 = sshll.u32 %s1168_s10, 5 }
  0x16   : > { %s1382_s9 = scalar_select %p1163_p12, 1, 0 }
  0x17   : > { %p1172_p13 = pnand %p841_p10, %p41_p5  ;;  %s243_s14 = sand.u32 1, %s1067_s24  }
  0x18   : > { %1383 = sst [smem:[#allocation15_spill]] %s1382_s9  ;;  %s247_s18 = scalar_lea.vmem [#allocation5], %s1368_s12 }
  0x19   : > { %s1385_s3 = sld [smem:[#allocation16_spill]]  ;;  %s255_s19 = sshll.u32 %s247_s18, 4  ;;  %s256_s19 = int_to_ptr.vmem [resolvable:$true] %s255_s19 }
  0x1a   : > { %p784_p0 = scmp.ge.s32.totalorder %s1067_s24, 1  ;;  %s1185_s26 = scalar_lea.sflag [#allocation6], %s243_s14 }
  0x1b   : > { %p911_p2 = pneg %p1172_p13 }
  0x1f   : > { %s252_s17 = scalar_lea.hbm %s1385_s3, %s1369_s11  ;;  %s914_s18 = scalar_lea.hbm %s1385_s3, 64 }
  0x20   : > { %s253_s20 = sshll.u32 %s252_s17, 4  ;;  %s254_s20 = int_to_ptr.hbm [resolvable:$true] %s253_s20 }
  0x21   : > { %s907_s28 = sshra.s32 %s254_s20, 4  ;;  %s908_s28 = int_to_ptr.hbm [resolvable:$true] %s907_s28 }
  0x22   : > { %s909_s29 = scalar_lea.hbm %s908_s28, 32  ;;  %p915_p5 = scmp.lt.s32.totalorder %s908_s28, %s1385_s3 }
  0x23   : > { %p910_p1 = scmp.ne.s32.totalorder %s908_s28, %s909_s29  ;;  %p916_p7 = scmp.lt.s32.totalorder %s914_s18, %s909_s29 }
  0x25   : > { %p912_p3 = pnand %p911_p2, %p910_p1  ;;  %p917_p8 = por %p916_p7, %p915_p5 }
  0x27   : > { %p913_p4 = pneg %p912_p3 }
  0x29   : > { %p918_p10 = pnand %p917_p8, %p913_p4 }
  0x2b   : > { %921 = shalt.err (!%p918_p10)
}
  0x2c   : > { %s1373_s14 = smov 128   ;;  %s1070_s11 = smov 8  }
  0x2d   : > { %833 = dma.hbm_to_vmem [thread:$0]  (!%p1172_p13), %s254_s20, 512, %s256_s19, %s1185_s26, %s1373_s14, %s1373_s14, %s1070_s11  }
  0x2e   : > { %p293_p1 = scmp.lt.s32.totalorder %s1067_s24, 3  ;;  %s1386_s12 = sshll.u32 %s1067_s24, 5 }
  0x2f   : > { %s230_s15 = scalar_lea.hbm %s1361_s0, %s1386_s12  ;;  %s1388_s17 = sshll.u32 %s1168_s10, 5 }
  0x30   : > { %p1212_p3 = pnand %p784_p0, %p293_p1  ;;  %s231_s18 = sshll.u32 %s230_s15, 4  ;;  %s232_s18 = int_to_ptr.hbm [resolvable:$true] %s231_s18 }
  0x31   : > { %s225_s3 = scalar_lea.vmem [#allocation2], %s1388_s17  ;;  %s781_s23 = sshll.u32 %s1168_s10, 4 }
  0x32   : > { %s233_s30 = sshll.u32 %s225_s3, 4  ;;  %s222_s27 = scalar_lea.sflag [#allocation3], %s1168_s10  ;;  %s234_s30 = int_to_ptr.vmem [resolvable:$true] %s233_s30 }
  0x33   : > { %s937_s19 = sshra.s32 %s232_s18, 4  ;;  %s944_s29 = scalar_lea.hbm %s1361_s0, 64  ;;  %s938_s19 = int_to_ptr.hbm [resolvable:$true] %s937_s19 }
  0x34   : > { %s939_s20 = scalar_lea.hbm %s938_s19, 32  ;;  %p945_p0 = scmp.lt.s32.totalorder %s938_s19, %s1361_s0 }
  0x35   : > { %p940_p4 = scmp.ne.s32.totalorder %s938_s19, %s939_s20  ;;  %p946_p8 = scmp.lt.s32.totalorder %s944_s29, %s939_s20 }
  0x37   : > { %p942_p5 = pnand %p940_p4, %p911_p2  ;;  %p947_p10 = por %p946_p8, %p945_p0 }
  0x39   : > { %p943_p7 = pneg %p942_p5 }
  0x3b   : > { %p948_p1 = pnand %p947_p10, %p943_p7 }
  0x3d   : > { %951 = shalt.err (!%p948_p1)
}
  0x3e   : > { %s1389_s3 = smov 128   ;;  %s807_s10 = sshll.u32 %s1067_s24, 4 }
  0x3f   : > { %830 = dma.hbm_to_vmem [thread:$0]  (!%p1172_p13), %s232_s18, 512, %s234_s30, %s222_s27, %s1389_s3, %s1389_s3, %s1070_s11  }
  0x40   : > { %s274_s28 = scalar_lea.hbm %s1365_s4, %s807_s10  ;;  %s269_s9 = scalar_lea.vmem [#allocation7], %s781_s23 }
  0x41   : > { %s277_s14 = sshll.u32 %s269_s9, 4  ;;  %s275_s19 = sshll.u32 %s274_s28, 4  ;;  %s278_s14 = int_to_ptr.vmem [resolvable:$true] %s277_s14  ;;  %s276_s19 = int_to_ptr.hbm [resolvable:$true] %s275_s19 }
  0x42   : > { %s967_s20 = sshra.s32 %s276_s19, 4  ;;  %s974_s30 = scalar_lea.hbm %s1365_s4, 32  ;;  %s968_s20 = int_to_ptr.hbm [resolvable:$true] %s967_s20 }
  0x43   : > { %s969_s29 = scalar_lea.hbm %s968_s20, 16  ;;  %p975_p0 = scmp.lt.s32.totalorder %s968_s20, %s1365_s4 }
  0x44   : > { %p970_p4 = scmp.ne.s32.totalorder %s968_s20, %s969_s29  ;;  %p976_p8 = scmp.lt.s32.totalorder %s974_s30, %s969_s29 }
  0x46   : > { %p972_p5 = pnand %p970_p4, %p911_p2  ;;  %p977_p10 = por %p976_p8, %p975_p0 }
  0x48   : > { %p973_p7 = pneg %p972_p5 }
  0x4a   : > { %p978_p1 = pnand %p977_p10, %p973_p7 }
  0x4c   : > { %981 = shalt.err (!%p978_p1)
}
  0x4d   : > { %836 = dma.hbm_to_vmem [thread:$0]  (!%p1172_p13), %s276_s19, 256, %s278_s14, %s1185_s26, %s1389_s3, %s1389_s3, %s1070_s11  }
  0x4e   : > { %297 = sbr.rel (%p1212_p3) target bundleno = 801 (0x321), region = 44  ;;  %s1256_s23 = sand.u32 (!%p1212_p3), 1, %s1059_s22  }
  0x4f   : > { %s785_s9 = sshll.u32 (!%p1212_p3), %s1256_s23, 5  ;;  %s300_s10 = scalar_lea.sflag (!%p1212_p3), [#allocation3], %s1256_s23 }
  0x50   : > { %s303_s12 = scalar_lea.vmem (!%p1212_p3), [#allocation2], %s785_s9 }
  0x53   : > { %1042 = dma.done.wait (%p1152_p6), %s300_s10, 512  }
  0x54   : > { %1044 = vsyncadd (%p1152_p6), %s300_s10, 4294966784  ;;  %s309_s11 = sand.u32 1, %s1134_s25   ;;  %s313_s26 = scalar_lea.vmem [#allocation5], %s785_s9 }
  0x55   : > { %s310_s13 = scalar_lea.sflag [#allocation6], %s309_s11 }
  0x56   : > { %1046 = dma.done.wait (%p1152_p6), %s310_s13, 768  }
  0x57   : > { %1048 = vsyncadd (%p1152_p6), %s310_s13, 4294966528  ;;  %v790_v0 = vld [vmem:[%s303_s12 + $0x10] sm:$0xff]  ;;  %v791_v1 = vld [vmem:[%s303_s12 + $0x18] sm:$0xff]  ;;  %s1071_s16 = smov 16   ;;  %s1072_s27 = smov 112   ;;  %vm386_vm0 = vcmask 130048  }
  0x58   : > { %v884_v2 = vpack.i.bf16 %v790_v0, %v791_v1  ;;  %v795_v3 = vld [vmem:[%s313_s26 + $0x18] sm:$0xff]  ;;  %v794_v4 = vld [vmem:[%s313_s26 + $0x10] sm:$0xff]  ;;  %v374_v7 = vld [vmem:[%s303_s12 + $0x8] sm:$0xff]  ;;  %p368_p6 = scmp.lt.s32.totalorder %s1134_s25, 1  ;;  %s1073_s3 = smov 8   ;;  %vm477_vm1 = vcmask 261120  }
  0x59   : > { %v430_v5 = vsub.f32 %v791_v1, %v795_v3  ;;  %v429_v6 = vsub.f32 %v790_v0, %v794_v4  ;;  %v421_v8 = vld [vmem:[%s313_s26 + $0x8] sm:$0xff]  ;;  %v373_v11 = vld [vmem:[%s303_s12] sm:$0xff]  ;;  %v545_v16 = vld [vmem:[%s1363_s2 + $0x10] sm:$0xff]  ;;  %s787_s12 = sshll.u32 %s1256_s23, 4  ;;  %s1074_s28 = smov 6   ;;  %vm529_vm7 = vcmask 64512  }
  0x5a   : > { %885 = vrot.lane.b32.xlu0 %v884_v2, %s1071_s16  ;;  %v423_v10 = vsub.f32 %v374_v7, %v421_v8  ;;  %v420_v12 = vld [vmem:[%s313_s26] sm:$0xff]  ;;  %v546_v17 = vld [vmem:[%s1363_s2 + $0x18] sm:$0xff]  ;;  %v544_v20 = vld [vmem:[%s1363_s2 + $0x8] sm:$0xff]  ;;  %s369_s10 = scalar_select %p368_p6, %s1134_s25, 1  ;;  %vm614_vm10 = vcmask 46080  }
  0x5b   : > { %v432_v9 = vmul.f32 %v430_v5, %v430_v5  ;;  %v431_v13 = vmul.f32 %v429_v6, %v429_v6  ;;  %v422_v15 = vsub.f32 %v373_v11, %v420_v12  ;;  %v543_v18 = vld [vmem:[%s1363_s2] sm:$0xff]  ;;  %v889_v19 = vpack.i.bf16 %v545_v16, %v546_v17  ;;  %493 = vmatpush.msra.mxu1 %v546_v17  ;;  %v390_v30 = vld [vmem:[%s1362_s1 + $0x8] sm:$0x3f]  ;;  %s1303_s7 = scalar_lea.vmem [#allocation7], %s787_s12  ;;  %s1075_s14 = smov 120  }
  0x5c   : > { %v425_v14 = vmul.f32 %v423_v10, %v423_v10  ;;  %v894_v23 = vpack.i.bf16 %v543_v18, %v544_v20  ;;  %v389_v29 = vld [vmem:[%s1362_s1] sm:$0xff]  ;;  %s808_s11 = sshll.u32 %s369_s10, 4  ;;  %v797_v38 = vld [vmem:[%s1303_s7 + $0x8] sm:$0xff]  ;;  %s1076_s19 = smov 122  }
  0x5d   : > { %v424_v22 = vmul.f32 %v422_v15, %v422_v15  ;;  %494 = vmatpush.msra.mxu1 %v545_v16  ;;  %s1301_s16 = scalar_lea.vmem %s1366_s5, %s808_s11  ;;  %v501_v8 = vld [vmem:[%s1303_s7] sm:$0xff]  ;;  %s811_s20 = smul.u32 24, %s1256_s23 }
  0x5e   : > { %v1281_v21 = vadd.f32 %v432_v9, %v425_v14  ;;  %895 = vrot.lane.b32.xlu1 %v894_v23, %s1072_s27  ;;  %v800_v39 = vld [vmem:[%s1301_s16 + $0x8] sm:$0x3f]  ;;  %s818_s30 = smul.u32 24, %s1134_s25  ;;  %s629_s13 = scalar_lea.sflag [#allocation4], %s1256_s23 }
  0x5f   : > { %v1283_v24 = vadd.f32 %v431_v13, %v424_v22  ;;  %495 = vmatpush.msra.mxu1 %v544_v20  ;;  %592 = vrot.lane.b32.xlu2 %v800_v39, %s1074_s28  ;;  %s367_s15 = scalar_lea.vmem [#allocation8], %s811_s20  ;;  %s1017_s28 = scalar_lea.hbm %s1367_s6, 48 }
  0x60   : > { %vm454_vm4 = vcmp.eq.f32.partialorder %v1281_v21, inf  ;;  %v457_v0 = vand.u32 2147483648, %v1281_v21  ;;  %vm456_vm5 = vcmp.eq.f32.partialorder %v1281_v21, 0.0  ;;  %s640_s9 = scalar_lea.hbm %s1367_s6, %s818_s30  ;;  %s641_s10 = sshll.u32 %s367_s15, 4  ;;  %s642_s10 = int_to_ptr.vmem [resolvable:$true] %s641_s10 }
  0x61   : > { %496 = vmatpush.msra.mxu1 %v543_v18  ;;  %899 = vrsqrt.f32 %v1283_v24  ;;  %vm442_vm2 = vcmp.eq.f32.partialorder %v1283_v24, inf  ;;  %v445_v61 = vand.u32 2147483648, %v1283_v24  ;;  %vm444_vm3 = vcmp.eq.f32.partialorder %v1283_v24, 0.0  ;;  %s643_s12 = sshll.u32 %s640_s9, 4  ;;  %s644_s12 = int_to_ptr.hbm [resolvable:$true] %s643_s12 }
  0x62   : > { %890 = vrot.lane.b32.xlu0 %v889_v19, %s1072_s27  ;;  %901 = vrsqrt.f32 %v1281_v21  ;;  %s1011_s26 = sshra.s32 %s644_s12, 4  ;;  %s1012_s26 = int_to_ptr.hbm [resolvable:$true] %s1011_s26 }
  0x63   : > { %p1018_p4 = scmp.lt.s32.totalorder %s1012_s26, %s1367_s6 }
  0x66   : > { %507 = vrot.lane.b32.xlu1 %v797_v38, %s1073_s3 }
  0x67   : > { %v900_v50 = vpop.eup %899 }
  0x68   : > { %v902_v51 = vpop.eup %901  ;;  %v436_v52 = vmul.f32 %v900_v50, %v1283_v24 }
  0x69   : > { %v448_v53 = vmul.f32 %v902_v51, %v1281_v21 }
  0x6a   : > { %v437_v54 = vmul.f32 %v900_v50, %v436_v52 }
  0x6b   : > { %v449_v55 = vmul.f32 %v902_v51, %v448_v53 }
  0x6c   : > { %v438_v56 = vmul.f32 0.5, %v437_v54 }
  0x6d   : > { %v450_v57 = vmul.f32 0.5, %v449_v55 }
  0x6e   : > { %v439_v58 = vsub.f32 1.5, %v438_v56 }
  0x6f   : > { %v451_v59 = vsub.f32 1.5, %v450_v57 }
  0x70   : > { %v440_v60 = vmul.f32 %v900_v50, %v439_v58 }
  0x71   : > { %v452_v62 = vmul.f32 %v902_v51, %v451_v59 }
  0x72   : > { %v441_v63 = vmul.f32 %v440_v60, %v1283_v24 }
  0x73   : > { %v453_v1 = vmul.f32 %v452_v62, %v1281_v21 }
  0x74   : > { %v443_v2 = vsel %vm442_vm2, %v1283_v24, %v441_v63 }
  0x75   : > { %v446_v3 = vsel %vm444_vm3, %v445_v61, %v443_v2  ;;  %v455_v4 = vsel %vm454_vm4, %v1281_v21, %v453_v1 }
  0x76   : > { %v458_v5 = vsel %vm456_vm5, %v457_v0, %v455_v4  ;;  %v459_v6 = vsel %vm386_vm0, %v446_v3, 0.0 }
  0xb9   : > { %v593_v46 = vpop.permute.xlu2 %592 }
  0xcc   : > { %v886_v25 = vpop.permute.xlu0 %885 }
  0xcd   : > { %v888_v26 = vunpack.i.h.bf16 %v886_v25  ;;  %v887_v27 = vunpack.i.l.bf16 %v886_v25  ;;  %v586_v25 = vld [vmem:[%s1301_s16] sm:$0x3f]  ;;  %s1013_s16 = scalar_lea.hbm %s1012_s26, 24 }
  0xce   : > { %p1014_p13 = scmp.ne.s32.totalorder %s1012_s26, %s1013_s16  ;;  %p1019_p5 = scmp.lt.s32.totalorder %s1017_s28, %s1013_s16 }
  0xcf   : > { %v388_v28 = vsel %vm386_vm0, %v374_v7, %v887_v27  ;;  %v387_v31 = vsel %vm386_vm0, %v373_v11, %v888_v26  ;;  %v460_v7 = vsel %vm386_vm0, %v458_v5, 0.0 }
  0xd0   : > { %411 = vmatpush.msra.mxu0 %v388_v28  ;;  %809 = vmatpush.msra.mxu3 %v388_v28  ;;  %v896_v34 = vpop.permute.xlu1 %895  ;;  %v461_v9 = vadd.f32 %v460_v7, %v459_v6  ;;  %p1015_p2 = pnand %p1014_p13, %p1159_p11  ;;  %p1020_p7 = por %p1019_p5, %p1018_p4 }
  0xd1   : > { %v897_v36 = vunpack.i.l.bf16 %v896_v34  ;;  %v898_v37 = vunpack.i.h.bf16 %v896_v34 }
  0xd2   : > { %412 = vmatpush.msra.mxu0 %v387_v31  ;;  %810 = vmatpush.msra.mxu3 %v387_v31  ;;  %p1016_p3 = pneg %p1015_p2 }
  0xd3   : > { %792 = vmatmul.msk.f32.vlgmr.msra.gmra.mxu0 %vm386_vm0, %v389_v29  ;;  %793 = vmatmul.msk.f32.vlgmr.msra.gmra.mxu3 %vm386_vm0, %v390_v30 }
  0xd4   : > { %v891_v32 = vpop.permute.xlu0 %890  ;;  %462 = vadd.xlane.f32.xlu1 %v461_v9  ;;  %p1021_p0 = pnand %p1020_p7, %p1016_p3 }
  0xd5   : > { %v892_v33 = vunpack.i.l.bf16 %v891_v32  ;;  %v893_v35 = vunpack.i.h.bf16 %v891_v32 }
  0xd7   : > { %578 = vmatpush.msra.mxu2 %v892_v33 }
  0xd8   : > { %v508_v42 = vpop.permute.xlu1 %507 }
  0xd9   : > { %579 = vmatpush.msra.mxu2 %v893_v35 }
  0xdb   : > { %580 = vmatpush.msra.mxu2 %v897_v36 }
  0xdd   : > { %581 = vmatpush.msra.mxu2 %v898_v37 }
 0x150   : > { %v414_v40 = vpop.f32.mrf.mxu0 }
 0x151   : > { %796 = vmatmul.msk.f32.vlgmr.msra.gmra.mxu1 %vm477_vm1, %v414_v40 }
 0x156   : > { %v417_v41 = vpop.f32.mrf.mxu3 }
 0x157   : > { %799 = vmatmul.msk.f32.vlgmr.msra.gmra.mxu2 %vm477_vm1, %v417_v41  ;;  %v463_v41 = vpop.xlane.xlu1 %462 }
 0x1ce   : > { %v498_v43 = vpop.f32.mrf.mxu1 }
 0x1cf   : > { %v510_v44 = vsub.f32 %v498_v43, %v508_v42  ;;  %v502_v10 = vsub.f32 %v498_v43, %v501_v8  ;;  %v464_v42 = vrot.slane %v463_v41, 4 }
 0x1d1   : > { %v511_v45 = vmul.f32 %v510_v44, %v510_v44  ;;  %v503_v11 = vmul.f32 %v502_v10, %v502_v10  ;;  %v465_v43 = vadd.f32 %v464_v42, %v463_v41 }
 0x1d3   : > { %513 = vrot.lane.b32.xlu2 %v511_v45, %s1075_s14  ;;  %v466_v44 = vrot.slane %v465_v43, 2 }
 0x1d5   : > { %v467_v45 = vadd.f32 %v466_v44, %v465_v43 }
 0x1da   : > { %v583_v47 = vpop.f32.mrf.mxu2 }
 0x1db   : > { %v595_v48 = vsub.f32 %v583_v47, %v593_v46  ;;  %v587_v26 = vsub.f32 %v583_v47, %v586_v25  ;;  %v468_v46 = vrot.slane %v467_v45, 1 }
 0x1dd   : > { %v596_v49 = vmul.f32 %v595_v48, %v595_v48  ;;  %v588_v27 = vmul.f32 %v587_v26, %v587_v26  ;;  %v469_v47 = vadd.f32 %v468_v46, %v467_v45 }
 0x1df   : > { %598 = vrot.lane.b32.xlu0 %v596_v49, %s1076_s19  ;;  %812 = vpush %v469_v47 }
 0x210   : > { %s813_s29 = spop %812 }
 0x211   : > { %v471_v55 = vstv %s813_s29 }
 0x212   : > { %472 = vst [vmem:[%s367_s15] sm:$0xff] %v471_v55 }
 0x22d   : > { %v514_v12 = vpop.permute.xlu2 %513 }
 0x22e   : > { %v516_v13 = vadd.f32 %v514_v12, %v503_v11 }
 0x230   : > { %903 = vrsqrt.f32 %v516_v13  ;;  %vm524_vm6 = vcmp.eq.f32.partialorder %v516_v13, inf  ;;  %v527_v21 = vand.u32 2147483648, %v516_v13  ;;  %vm526_vm8 = vcmp.eq.f32.partialorder %v516_v13, 0.0 }
 0x236   : > { %v904_v14 = vpop.eup %903 }
 0x237   : > { %v518_v15 = vmul.f32 %v904_v14, %v516_v13 }
 0x239   : > { %v519_v16 = vmul.f32 %v904_v14, %v518_v15 }
 0x23b   : > { %v520_v17 = vmul.f32 0.5, %v519_v16 }
 0x23d   : > { %v521_v18 = vsub.f32 1.5, %v520_v17 }
 0x23f   : > { %v522_v19 = vmul.f32 %v904_v14, %v521_v18 }
 0x241   : > { %v523_v20 = vmul.f32 %v522_v19, %v516_v13 }
 0x243   : > { %v525_v22 = vsel %vm524_vm6, %v516_v13, %v523_v20 }
 0x244   : > { %v528_v23 = vsel %vm526_vm8, %v527_v21, %v525_v22 }
 0x245   : > { %v530_v24 = vsel %vm529_vm7, %v528_v23, 0.0 }
 0x246   : > { %531 = vadd.xlane.f32.xlu2 %v530_v24 }
 0x251   : > { %v599_v28 = vpop.permute.xlu0 %598 }
 0x252   : > { %v601_v29 = vadd.f32 %v599_v28, %v588_v27 }
 0x254   : > { %905 = vrsqrt.f32 %v601_v29  ;;  %vm609_vm9 = vcmp.eq.f32.partialorder %v601_v29, inf  ;;  %v612_v37 = vand.u32 2147483648, %v601_v29  ;;  %vm611_vm11 = vcmp.eq.f32.partialorder %v601_v29, 0.0 }
 0x25a   : > { %v906_v30 = vpop.eup %905 }
 0x25b   : > { %v603_v31 = vmul.f32 %v906_v30, %v601_v29 }
 0x25d   : > { %v604_v32 = vmul.f32 %v906_v30, %v603_v31 }
 0x25f   : > { %v605_v33 = vmul.f32 0.5, %v604_v32 }
 0x261   : > { %v606_v34 = vsub.f32 1.5, %v605_v33 }
 0x263   : > { %v607_v35 = vmul.f32 %v906_v30, %v606_v34 }
 0x265   : > { %v608_v36 = vmul.f32 %v607_v35, %v601_v29 }
 0x267   : > { %v610_v38 = vsel %vm609_vm9, %v601_v29, %v608_v36 }
 0x268   : > { %v613_v39 = vsel %vm611_vm11, %v612_v37, %v610_v38 }
 0x269   : > { %v615_v40 = vsel %vm614_vm10, %v613_v39, 0.0 }
 0x26a   : > { %616 = vadd.xlane.f32.xlu0 %v615_v40 }
 0x2b9   : > { %v532_v48 = vpop.xlane.xlu2 %531 }
 0x2ba   : > { %v533_v49 = vrot.slane %v532_v48, 4 }
 0x2bc   : > { %v534_v50 = vadd.f32 %v533_v49, %v532_v48 }
 0x2be   : > { %v535_v51 = vrot.slane %v534_v50, 2 }
 0x2c0   : > { %v536_v52 = vadd.f32 %v535_v51, %v534_v50 }
 0x2c2   : > { %v537_v53 = vrot.slane %v536_v52, 1 }
 0x2c4   : > { %v538_v54 = vadd.f32 %v537_v53, %v536_v52 }
 0x2c6   : > { %814 = vpush %v538_v54 }
 0x2dd   : > { %v617_v56 = vpop.xlane.xlu0 %616 }
 0x2de   : > { %v618_v57 = vrot.slane %v617_v56, 4 }
 0x2e0   : > { %v619_v58 = vadd.f32 %v618_v57, %v617_v56 }
 0x2e2   : > { %v620_v59 = vrot.slane %v619_v58, 2 }
 0x2e4   : > { %v621_v60 = vadd.f32 %v620_v59, %v619_v58 }
 0x2e6   : > { %v622_v61 = vrot.slane %v621_v60, 1 }
 0x2e8   : > { %v623_v62 = vadd.f32 %v622_v61, %v621_v60 }
 0x2ea   : > { %816 = vpush %v623_v62 }
 0x2f7   : > { %s815_s27 = spop %814 }
 0x2f8   : > { %v540_v63 = vstv %s815_s27 }
 0x2f9   : > { %798 = vst [vmem:[%s367_s15 + $0x8] sm:$0xff] %v540_v63 }
 0x31b   : > { %s817_s11 = spop %816 }
 0x31c   : > { %v625_v0 = vstv %s817_s11 }
 0x31d   : > { %801 = vst [vmem:[%s367_s15 + $0x10] sm:$0xff] %v625_v0 }
 0x31e   : > { %1024 = shalt.err (!%p1021_p0)
}
 0x31f   : > { %s1077_s23 = smov 128  }
 0x320   : > { %825 = dma.vmem_to_hbm [thread:$0]  (%p1159_p11), %s642_s10, 384, %s644_s12, %s629_s13, %s1077_s23, %s1077_s23, %s1073_s3  }
 0x321 PF: > { %s658_s29 = sand.u32 1, %s1055_s21   ;;  %p838_p8 = pnand %p774_p9, %p1163_p12 }
 0x322   : > { %s659_s15 = scalar_lea.sflag [#allocation4], %s658_s29 }
 0x323   : > { %p839_p10 = pneg %p838_p8 }
 0x325   : > { %1050 = dma.done.wait (%p839_p10), %s659_s15, 384  }
 0x326   : > { %1052 = vsyncadd (%p839_p10), %s659_s15, 4294966912  ;;  %s1391_s24 = sld [smem:[#allocation13_spill]]  ;;  %s1394_s21 = smov %s1059_s22 }
 0x327   : > { %s1392_s27 = sld [smem:[#allocation12_spill]] }
 0x328   : > { %s1393_s23 = sld [smem:[#allocation14_spill]] }
 0x32c   : > { %p22_p1 = scmp.ge.s32.totalorder %s1391_s24, 4  }
 0x32d   : > { %s1395_s22 = smov %s1392_s27 }
 0x32e   :  { %24 = sbr.rel (!%p22_p1) target bundleno = 9 (0x9), region = 122 }
 0x333   :  { %665 = vsyncpa [#allocation3], 1 }
 0x334   :  { %667 = vsyncpa [#allocation3 + $0x1], 1 }
 0x335   :  { %668 = vsyncpa [#allocation6], 1 }
 0x336   :  { %670 = vsyncpa [#allocation6 + $0x1], 1 }
 0x337   :  { %671 = vsyncpa [#allocation4], 1 }
 0x338   :  { %673 = vsyncpa [#allocation4 + $0x1], 1 }

</bundles_post_ra>
